<compile_context>
chip_gen: v6e
topology: v6e:2x2x1
jax: 0.10.0
libtpu: 0.0.40
codegen_flags: <defaults>
</compile_context>

<pallas_src>
import jax
import jax.numpy as jnp
import numpy as np
from jax.experimental import pallas as pl
from jax.experimental.pallas import tpu as pltpu

H1 = 128  # fc1 width
H2 = 64   # fc2 width


def critic_kernel(s_ref, a_ref, w1s_ref, w1a_ref, b1_ref,
                  w2_ref, b2_ref, w3_ref, b3_ref, o_ref):
    # fc1 without a concat: concat([s, a], 1) @ W1 == s @ W1_s + a @ W1_a.
    # Operands may be bf16 (default) or f32; accumulation is always f32.
    h1 = jnp.dot(s_ref[...], w1s_ref[...], preferred_element_type=jnp.float32)
    h1 = h1 + jnp.dot(a_ref[...], w1a_ref[...], preferred_element_type=jnp.float32)
    h1 = jnp.maximum(h1 + b1_ref[...], 0.0)          # f32 bias + ReLU (VPU)

    # fc2 + ReLU: MXU matmul (bf16 or f32 operands, f32 accumulation).
    h2 = jnp.dot(h1.astype(w2_ref.dtype), w2_ref[...],
                 preferred_element_type=jnp.float32) + b2_ref[...]
    h2 = jnp.maximum(h2, 0.0)

    # fc3: 1-column matmul demoted to VPU multiply + XLU cross-lane reduce.
    q = jnp.sum(h2 * w3_ref[...], axis=-1, keepdims=True) + b3_ref[...]
    o_ref[...] = q.astype(o_ref.dtype)


def _round_up(x, m):
    return ((x + m - 1) // m) * m


def critic_forward(state, action, params, *, block_b=8192, use_bf16=True):
    """state: (B, state_dim), action: (B, action_dim) -> q: (B, 1) float32."""
    w1, b1, w2, b2, w3, b3 = params
    B, state_dim = state.shape
    action_dim = action.shape[1]

    # Split fc1 weights so no activation concat is needed.
    w1_s = w1[:state_dim]                 # (state_dim, 128)
    w1_a = w1[state_dim:]                 # (action_dim, 128)
    w3_row = w3.reshape(1, H2)            # (1, 64) row for the VPU/XLU reduce

    # bf16 MXU path: cast matmul operands only; biases / w3 / accum stay f32.
    mm_dtype = jnp.bfloat16 if use_bf16 else jnp.float32
    state_c = state.astype(mm_dtype)
    action_c = action.astype(mm_dtype)
    w1_s = w1_s.astype(mm_dtype)
    w1_a = w1_a.astype(mm_dtype)
    w2_c = w2.astype(mm_dtype)
    b1 = b1.astype(jnp.float32)
    b2 = b2.astype(jnp.float32)
    w3_row = w3_row.astype(jnp.float32)
    b3 = b3.astype(jnp.float32)

    # Batch tile: multiple of 8, large enough to amortize per-step overhead,
    # but capped so the grid keeps >= 2 steps (v7x megacore) when B allows.
    TB = _round_up(B, 8)
    if B >= 16:
        TB = min(TB, _round_up(pl.cdiv(B, 2), 8))
    TB = min(TB, block_b)
    grid = (pl.cdiv(B, TB),)

    # Advisory cost estimate for XLA's scheduler.
    flops = 2 * B * ((state_dim + action_dim) * H1 + H1 * H2 + H2)
    operands = (state_c, action_c, w1_s, w1_a, b1, w2_c, b2, w3_row, b3)
    bytes_accessed = B * 4 + sum(int(x.size) * x.dtype.itemsize for x in operands)
    cost = pl.CostEstimate(flops=flops, transcendentals=0,
                           bytes_accessed=bytes_accessed)

    const = lambda i: (0, 0)   # weights/biases: VMEM-resident across steps
    row = lambda i: (i, 0)     # batch-tiled operands

    return pl.pallas_call(
        critic_kernel,
        out_shape=jax.ShapeDtypeStruct((B, 1), jnp.float32),
        grid=grid,
        in_specs=[
            pl.BlockSpec((TB, state_dim), row),     # state
            pl.BlockSpec((TB, action_dim), row),    # action
            pl.BlockSpec((state_dim, H1), const),   # w1_s
            pl.BlockSpec((action_dim, H1), const),  # w1_a
            pl.BlockSpec((1, H1), const),           # b1
            pl.BlockSpec((H1, H2), const),          # w2
            pl.BlockSpec((1, H2), const),           # b2
            pl.BlockSpec((1, H2), const),           # w3 (row)
            pl.BlockSpec((1, 1), const),            # b3
        ],
        out_specs=pl.BlockSpec((TB, 1), row),
        compiler_params=pltpu.CompilerParams(
            dimension_semantics=("parallel",)),
        cost_estimate=cost,
    )(state_c, action_c, w1_s, w1_a, b1, w2_c, b2, w3_row, b3)


def init_params(key, state_dim, action_dim):
    """Deterministic init mimicking PyTorch nn.Linear (uniform +/- 1/sqrt(fan_in))."""
    dims = [(state_dim + action_dim, H1), (H1, H2), (H2, 1)]
    params = []
    for fan_in, fan_out in dims:
        kw, kb, key = jax.random.split(key, 3)
        bound = 1.0 / np.sqrt(fan_in)
        w = jax.random.uniform(kw, (fan_in, fan_out), jnp.float32, -bound, bound)
        b = jax.random.uniform(kb, (1, fan_out), jnp.float32, -bound, bound)
        params += [w, b]
    return tuple(params)


def reference_forward(state, action, params):
    w1, b1, w2, b2, w3, b3 = params
    x = jnp.concatenate([state, action], axis=1)
    h1 = jnp.maximum(x @ w1 + b1, 0.0)
    h2 = jnp.maximum(h1 @ w2 + b2, 0.0)
    return h2 @ w3 + b3


if __name__ == "__main__":
    key = jax.random.PRNGKey(0)
    k_state, k_action, k_params, k_state2, k_action2 = jax.random.split(key, 5)

    state_dim, action_dim = 16, 8
    params = init_params(k_params, state_dim, action_dim)

    # --- Test 1: small batch, all-f32 path, tight tolerance ---
    state = jax.random.normal(k_state, (2, state_dim), jnp.float32)
    action = jax.random.normal(k_action, (2, action_dim), jnp.float32)
    q_ref = reference_forward(state, action, params)

    q_f32 = jax.block_until_ready(critic_forward(state, action, params, use_bf16=False))
    np.testing.assert_allclose(np.asarray(q_f32), np.asarray(q_ref),
                               rtol=1e-5, atol=1e-5)

    # --- Test 2: default bf16-MXU path (f32 accumulation), loose tolerance ---
    q_bf16 = jax.block_until_ready(critic_forward(state, action, params))
    np.testing.assert_allclose(np.asarray(q_bf16), np.asarray(q_ref),
                               rtol=5e-2, atol=5e-2)

    # --- Test 3: multi-step grid with a padded last tile (B=20 -> TB=16, 2 steps) ---
    state2 = jax.random.normal(k_state2, (20, state_dim), jnp.float32)
    action2 = jax.random.normal(k_action2, (20, action_dim), jnp.float32)
    q2 = jax.block_until_ready(critic_forward(state2, action2, params))
    q2_ref = reference_forward(state2, action2, params)
    np.testing.assert_allclose(np.asarray(q2), np.asarray(q2_ref),
                               rtol=5e-2, atol=5e-2)

    print("KERNEL_OK")
</pallas_src>

<mosaic_0001>
module attributes {stable_mosaic.version = 11 : i64} {
  func.func @critic_kernel(%arg0: i32, %arg1: memref<8x16xf32, #tpu.memory_space<vmem>>, %arg2: memref<8x8xf32, #tpu.memory_space<vmem>>, %arg3: memref<16x128xf32, #tpu.memory_space<vmem>>, %arg4: memref<8x128xf32, #tpu.memory_space<vmem>>, %arg5: memref<1x128xf32, #tpu.memory_space<vmem>>, %arg6: memref<128x64xf32, #tpu.memory_space<vmem>>, %arg7: memref<1x64xf32, #tpu.memory_space<vmem>>, %arg8: memref<1x64xf32, #tpu.memory_space<vmem>>, %arg9: memref<1x1xf32, #tpu.memory_space<vmem>>, %arg10: memref<8x1xf32, #tpu.memory_space<vmem>>) attributes {dimension_semantics = [#tpu.dimension_semantics<parallel>], iteration_bounds = array<i64: 1>, scalar_prefetch = 0 : i64, scratch_operands = 0 : i64, tpu.core_type = #tpu.core_type<tc>, window_params = [{transform_indices = @transform_0, window_bounds = array<i64: 8, 16>}, {transform_indices = @transform_1, window_bounds = array<i64: 8, 8>}, {pipeline_mode = #tpu.pipeline_mode<synchronous>, transform_indices = @transform_2, window_bounds = array<i64: 16, 128>}, {pipeline_mode = #tpu.pipeline_mode<synchronous>, transform_indices = @transform_3, window_bounds = array<i64: 8, 128>}, {pipeline_mode = #tpu.pipeline_mode<synchronous>, transform_indices = @transform_4, window_bounds = array<i64: 1, 128>}, {pipeline_mode = #tpu.pipeline_mode<synchronous>, transform_indices = @transform_5, window_bounds = array<i64: 128, 64>}, {pipeline_mode = #tpu.pipeline_mode<synchronous>, transform_indices = @transform_6, window_bounds = array<i64: 1, 64>}, {pipeline_mode = #tpu.pipeline_mode<synchronous>, transform_indices = @transform_7, window_bounds = array<i64: 1, 64>}, {pipeline_mode = #tpu.pipeline_mode<synchronous>, transform_indices = @transform_8, window_bounds = array<i64: 1, 1>}, {transform_indices = @transform_9, window_bounds = array<i64: 8, 1>}]} {
    %c0 = arith.constant 0 : index
    %c0_0 = arith.constant 0 : index
    %0 = vector.load %arg1[%c0, %c0_0] : memref<8x16xf32, #tpu.memory_space<vmem>>, vector<8x16xf32>
    %c0_1 = arith.constant 0 : index
    %c0_2 = arith.constant 0 : index
    %1 = vector.load %arg3[%c0_1, %c0_2] : memref<16x128xf32, #tpu.memory_space<vmem>>, vector<16x128xf32>
    %cst = arith.constant dense<0.000000e+00> : vector<8x128xf32>
    %2 = tpu.matmul %0, %1, %cst {dimension_numbers = #tpu.dot_dimension_numbers<[1], [0], [0], [1], [0, 0, 1, 1], [], []>} : vector<8x16xf32>, vector<16x128xf32>, vector<8x128xf32> -> vector<8x128xf32>
    %c0_3 = arith.constant 0 : index
    %c0_4 = arith.constant 0 : index
    %3 = vector.load %arg2[%c0_3, %c0_4] : memref<8x8xf32, #tpu.memory_space<vmem>>, vector<8x8xf32>
    %c0_5 = arith.constant 0 : index
    %c0_6 = arith.constant 0 : index
    %4 = vector.load %arg4[%c0_5, %c0_6] : memref<8x128xf32, #tpu.memory_space<vmem>>, vector<8x128xf32>
    %cst_7 = arith.constant dense<0.000000e+00> : vector<8x128xf32>
    %5 = tpu.matmul %3, %4, %cst_7 {dimension_numbers = #tpu.dot_dimension_numbers<[1], [0], [0], [1], [0, 0, 1, 1], [], []>} : vector<8x8xf32>, vector<8x128xf32>, vector<8x128xf32> -> vector<8x128xf32>
    %6 = arith.addf %2, %5 : vector<8x128xf32>
    %c0_8 = arith.constant 0 : index
    %c0_9 = arith.constant 0 : index
    %7 = vector.load %arg5[%c0_8, %c0_9] : memref<1x128xf32, #tpu.memory_space<vmem>>, vector<1x128xf32>
    %8 = vector.broadcast %7 : vector<1x128xf32> to vector<8x128xf32>
    %9 = arith.addf %6, %8 : vector<8x128xf32>
    %cst_10 = arith.constant 0.000000e+00 : f32
    %10 = vector.broadcast %cst_10 : f32 to vector<8x128xf32>
    %11 = arith.maximumf %9, %10 : vector<8x128xf32>
    %c0_11 = arith.constant 0 : index
    %c0_12 = arith.constant 0 : index
    %12 = vector.load %arg6[%c0_11, %c0_12] : memref<128x64xf32, #tpu.memory_space<vmem>>, vector<128x64xf32>
    %cst_13 = arith.constant dense<0.000000e+00> : vector<8x64xf32>
    %13 = tpu.matmul %11, %12, %cst_13 {dimension_numbers = #tpu.dot_dimension_numbers<[1], [0], [0], [1], [0, 0, 1, 1], [], []>} : vector<8x128xf32>, vector<128x64xf32>, vector<8x64xf32> -> vector<8x64xf32>
    %c0_14 = arith.constant 0 : index
    %c0_15 = arith.constant 0 : index
    %14 = vector.load %arg7[%c0_14, %c0_15] : memref<1x64xf32, #tpu.memory_space<vmem>>, vector<1x64xf32>
    %15 = vector.broadcast %14 : vector<1x64xf32> to vector<8x64xf32>
    %16 = arith.addf %13, %15 : vector<8x64xf32>
    %cst_16 = arith.constant 0.000000e+00 : f32
    %17 = vector.broadcast %cst_16 : f32 to vector<8x64xf32>
    %18 = arith.maximumf %16, %17 : vector<8x64xf32>
    %c0_17 = arith.constant 0 : index
    %c0_18 = arith.constant 0 : index
    %19 = vector.load %arg8[%c0_17, %c0_18] : memref<1x64xf32, #tpu.memory_space<vmem>>, vector<1x64xf32>
    %20 = vector.broadcast %19 : vector<1x64xf32> to vector<8x64xf32>
    %21 = arith.mulf %18, %20 : vector<8x64xf32>
    %cst_19 = arith.constant dense<0.000000e+00> : vector<8xf32>
    %22 = vector.multi_reduction <add>, %21, %cst_19 [1] : vector<8x64xf32> to vector<8xf32>
    %23 = vector.shape_cast %22 : vector<8xf32> to vector<8x1xf32>
    %c0_20 = arith.constant 0 : index
    %c0_21 = arith.constant 0 : index
    %24 = vector.load %arg9[%c0_20, %c0_21] : memref<1x1xf32, #tpu.memory_space<vmem>>, vector<1x1xf32>
    %25 = vector.broadcast %24 : vector<1x1xf32> to vector<8x1xf32>
    %26 = arith.addf %23, %25 : vector<8x1xf32>
    %c0_22 = arith.constant 0 : index
    %c0_23 = arith.constant 0 : index
    %27 = vector.load %arg10[%c0_22, %c0_23] : memref<8x1xf32, #tpu.memory_space<vmem>>, vector<8x1xf32>
    tpu.vector_store %arg10[%c0_22, %c0_23], %26 {strides = array<i32>} : memref<8x1xf32, #tpu.memory_space<vmem>>, vector<8x1xf32>,
    return
  }
  func.func @transform_0(%arg0: i32) -> (i32, i32) {
    %c0_i32 = arith.constant 0 : i32
    %c0_i32_0 = arith.constant 0 : i32
    return %arg0, %c0_i32 : i32, i32
  }
  func.func @transform_1(%arg0: i32) -> (i32, i32) {
    %c0_i32 = arith.constant 0 : i32
    %c0_i32_0 = arith.constant 0 : i32
    return %arg0, %c0_i32 : i32, i32
  }
  func.func @transform_2(%arg0: i32) -> (i32, i32) {
    %c0_i32 = arith.constant 0 : i32
    %c0_i32_0 = arith.constant 0 : i32
    %c0_i32_1 = arith.constant 0 : i32
    return %c0_i32, %c0_i32_0 : i32, i32
  }
  func.func @transform_3(%arg0: i32) -> (i32, i32) {
    %c0_i32 = arith.constant 0 : i32
    %c0_i32_0 = arith.constant 0 : i32
    %c0_i32_1 = arith.constant 0 : i32
    return %c0_i32, %c0_i32_0 : i32, i32
  }
  func.func @transform_4(%arg0: i32) -> (i32, i32) {
    %c0_i32 = arith.constant 0 : i32
    %c0_i32_0 = arith.constant 0 : i32
    %c0_i32_1 = arith.constant 0 : i32
    return %c0_i32, %c0_i32_0 : i32, i32
  }
  func.func @transform_5(%arg0: i32) -> (i32, i32) {
    %c0_i32 = arith.constant 0 : i32
    %c0_i32_0 = arith.constant 0 : i32
    %c0_i32_1 = arith.constant 0 : i32
    return %c0_i32, %c0_i32_0 : i32, i32
  }
  func.func @transform_6(%arg0: i32) -> (i32, i32) {
    %c0_i32 = arith.constant 0 : i32
    %c0_i32_0 = arith.constant 0 : i32
    %c0_i32_1 = arith.constant 0 : i32
    return %c0_i32, %c0_i32_0 : i32, i32
  }
  func.func @transform_7(%arg0: i32) -> (i32, i32) {
    %c0_i32 = arith.constant 0 : i32
    %c0_i32_0 = arith.constant 0 : i32
    %c0_i32_1 = arith.constant 0 : i32
    return %c0_i32, %c0_i32_0 : i32, i32
  }
  func.func @transform_8(%arg0: i32) -> (i32, i32) {
    %c0_i32 = arith.constant 0 : i32
    %c0_i32_0 = arith.constant 0 : i32
    %c0_i32_1 = arith.constant 0 : i32
    return %c0_i32, %c0_i32_0 : i32, i32
  }
  func.func @transform_9(%arg0: i32) -> (i32, i32) {
    %c0_i32 = arith.constant 0 : i32
    %c0_i32_0 = arith.constant 0 : i32
    return %arg0, %c0_i32 : i32, i32
  }
}

</mosaic_0001>

<bundles_post_ra>
// kernel: tpu_custom_call.1
= control target key start
LH: loop header
LB: loop body
LE: loop exit
PB: predicated region body
PF: predicated region fallthrough
CT: control target
= control target key end

     0   :  { %s563_s0 = inlined_call_operand.vmem [shape: f32[2,16], index: 0, kind: input, shape index: {}]   ;;  %s564_s1 = inlined_call_operand.vmem [shape: f32[2,8], index: 1, kind: input, shape index: {}]   ;;  %s565_s2 = inlined_call_operand.vmem [shape: f32[16,128], index: 2, kind: input, shape index: {}]   ;;  %s566_s3 = inlined_call_operand.vmem [shape: f32[8,128], index: 3, kind: input, shape index: {}]   ;;  %s567_s4 = inlined_call_operand.vmem [shape: f32[1,128], index: 4, kind: input, shape index: {}]   ;;  %s568_s5 = inlined_call_operand.vmem [shape: f32[128,64], index: 5, kind: input, shape index: {}]   ;;  %s569_s6 = inlined_call_operand.vmem [shape: f32[1,64], index: 6, kind: input, shape index: {}]   ;;  %s570_s7 = inlined_call_operand.vmem [shape: f32[1,64], index: 7, kind: input, shape index: {}]   ;;  %s571_s8 = inlined_call_operand.<no memory space> [shape: f32[1,1], index: 8, kind: input, shape index: {}]   ;;  %s572_s9 = inlined_call_operand.vmem [shape: f32[2,1], index: 9, kind: output, shape index: {}]  }
   0x1   :  { %v14_v0 = vstv %s571_s8 }
   0x2   :  { %15 = vst [vmem:[#allocation2] sm:$0x1] %v14_v0 }
   0x3   :  { %v38_v1 = vld [vmem:[%s566_s3] sm:$0xff]  ;;  %vm39_vm0 = vcmask 64512   ;;  %v430_v3 = vmov 0.0   ;;  %vm431_vm1 = vmmov 0   ;;  %v36_v4 = vld [vmem:[%s565_s2 + $0x8] sm:$0xff]  ;;  %v211_v5 = vld [vmem:[%s568_s5 + $0x78] sm:$0xff] }
   0x4   :  { %v37_v2 = vld [vmem:[%s564_s1] sm:$0xff]  ;;  %381 = vmatprep.subr.mxu1 %v430_v3  ;;  %383 = vmatprep.mubr.msk.f32.mxu1 %vm431_vm1, %v430_v3  ;;  %vm113_vm2 = vcmask 130048   ;;  %v210_v8 = vld [vmem:[%s568_s5 + $0x70] sm:$0xff]  ;;  %v209_v9 = vld [vmem:[%s568_s5 + $0x68] sm:$0xff]  ;;  %vm298_vm3 = vcmask 523264   ;;  %vm310_vm4 = vcmask 7168  }
   0x5   :  { %382 = vmatpush3.msra.mxu1 %v38_v1  ;;  %393 = vmatprep.subr.mxu0 %v430_v3  ;;  %v35_v6 = vld [vmem:[%s565_s2] sm:$0xff]  ;;  %v207_v11 = vld [vmem:[%s568_s5 + $0x58] sm:$0xff]  ;;  %v206_v12 = vld [vmem:[%s568_s5 + $0x50] sm:$0xff] }
   0x6   :  { %384 = vmatmul.mubr.msk.f32.vlgmr.msra.gmra.mxu1 %vm39_vm0, %v37_v2  ;;  %386 = vmatprep.subr.mxu1 %v430_v3  ;;  %v34_v7 = vld [vmem:[%s563_s0] sm:$0xff]  ;;  %v205_v13 = vld [vmem:[%s568_s5 + $0x48] sm:$0xff]  ;;  %v203_v15 = vld [vmem:[%s568_s5 + $0x38] sm:$0xff] }
   0x7   :  { %387 = vmatpush3.msra.mxu1 %v36_v4  ;;  %390 = vmatprep.mubr.msk.f32.mxu1 %vm431_vm1, %v430_v3  ;;  %v208_v10 = vld [vmem:[%s568_s5 + $0x60] sm:$0xff]  ;;  %v202_v16 = vld [vmem:[%s568_s5 + $0x30] sm:$0xff]  ;;  %v201_v17 = vld [vmem:[%s568_s5 + $0x28] sm:$0xff] }
   0x8   :  { %388 = vmatprep.subr.mxu1 %v430_v3  ;;  %394 = vmatpush3.msra.mxu0 %v211_v5  ;;  %v204_v14 = vld [vmem:[%s568_s5 + $0x40] sm:$0xff]  ;;  %v199_v19 = vld [vmem:[%s568_s5 + $0x18] sm:$0xff]  ;;  %v198_v20 = vld [vmem:[%s568_s5 + $0x10] sm:$0xff] }
   0x9   :  { %389 = vmatpush3.msra.mxu1 %v35_v6  ;;  %395 = vmatprep.subr.mxu0 %v430_v3  ;;  %v200_v18 = vld [vmem:[%s568_s5 + $0x20] sm:$0xff]  ;;  %v197_v21 = vld [vmem:[%s568_s5 + $0x8] sm:$0xff] }
   0xa   :  { %391 = vmatmul.mubr.msk.f32.vlgmr.msra.gmra.mxu1 %vm113_vm2, %v34_v7  ;;  %396 = vmatpush3.msra.mxu0 %v210_v8  ;;  %v196_v22 = vld [vmem:[%s568_s5] sm:$0xff] }
   0xb   :  { %397 = vmatprep.subr.mxu0 %v430_v3  ;;  %425 = vmatprep.mubr.msk.f32.mxu0 %vm431_vm1, %v430_v3  ;;  %v355_v26 = vld [vmem:[%s567_s4] ss:$0 sm:$0xff] }
   0xc   :  { %398 = vmatpush3.msra.mxu0 %v209_v9  ;;  %v356_v31 = vld [vmem:[%s569_s6] ss:$0 sm:$0xff] }
   0xd   :  { %399 = vmatprep.subr.mxu0 %v430_v3  ;;  %v357_v35 = vld [vmem:[%s570_s7] ss:$0 sm:$0xff] }
   0xe   :  { %400 = vmatpush3.msra.mxu0 %v208_v10  ;;  %v358_v39 = vld [vmem:[#allocation2] ss:$0 sm:$0xff] }
   0xf   :  { %401 = vmatprep.subr.mxu0 %v430_v3 }
  0x10   :  { %402 = vmatpush3.msra.mxu0 %v207_v11 }
  0x11   :  { %403 = vmatprep.subr.mxu0 %v430_v3 }
  0x12   :  { %404 = vmatpush3.msra.mxu0 %v206_v12 }
  0x13   :  { %405 = vmatprep.subr.mxu0 %v430_v3 }
  0x14   :  { %406 = vmatpush3.msra.mxu0 %v205_v13 }
  0x15   :  { %407 = vmatprep.subr.mxu0 %v430_v3 }
  0x16   :  { %408 = vmatpush3.msra.mxu0 %v204_v14 }
  0x17   :  { %409 = vmatprep.subr.mxu0 %v430_v3 }
  0x18   :  { %410 = vmatpush3.msra.mxu0 %v203_v15 }
  0x19   :  { %411 = vmatprep.subr.mxu0 %v430_v3 }
  0x1a   :  { %412 = vmatpush3.msra.mxu0 %v202_v16 }
  0x1b   :  { %413 = vmatprep.subr.mxu0 %v430_v3 }
  0x1c   :  { %414 = vmatpush3.msra.mxu0 %v201_v17 }
  0x1d   :  { %415 = vmatprep.subr.mxu0 %v430_v3 }
  0x1e   :  { %416 = vmatpush3.msra.mxu0 %v200_v18 }
  0x1f   :  { %417 = vmatprep.subr.mxu0 %v430_v3 }
  0x20   :  { %418 = vmatpush3.msra.mxu0 %v199_v19 }
  0x21   :  { %419 = vmatprep.subr.mxu0 %v430_v3 }
  0x22   :  { %420 = vmatpush3.msra.mxu0 %v198_v20 }
  0x23   :  { %421 = vmatprep.subr.mxu0 %v430_v3 }
  0x24   :  { %422 = vmatpush3.msra.mxu0 %v197_v21 }
  0x25   :  { %423 = vmatprep.subr.mxu0 %v430_v3 }
  0x26   :  { %424 = vmatpush3.msra.mxu0 %v196_v22 }
  0xc6   :  { %v109_v23 = vpop.f32.mrf.mxu1 }
  0xc8   :  { %v385_v24 = vpop.f32.mrf.mxu1 }
  0xca   :  { %v183_v25 = vpop.f32.mrf.mxu1 }
  0xcb   :  { %v184_v27 = vadd.f32 %v183_v25, %v109_v23 }
  0xcc   :  { %v392_v28 = vpop.f32.mrf.mxu1 }
  0xcd   :  { %v194_v29 = vadd.f32 %v355_v26, %v184_v27 }
  0xcf   :  { %v195_v30 = vmax.f32 %v194_v29, 0.0 }
  0xd1   :  { %426 = vmatmul.mubr.f32.vlgmr.msra.gmra.mxu0 %v195_v30 }
 0x191   :  { %v285_v32 = vpop.f32.mrf.mxu0 }
 0x192   :  { %v286_v33 = vadd.f32 %v356_v31, %v285_v32 }
 0x193   :  { %v427_v34 = vpop.f32.mrf.mxu0 }
 0x194   :  { %v289_v36 = vmax.f32 %v286_v33, 0.0 }
 0x196   :  { %v297_v37 = vmul.f32 %v357_v35, %v289_v36 }
 0x198   :  { %v299_v38 = vsel %vm298_vm3, %v297_v37, 0.0 }
 0x199   :  { %300 = vadd.xlane.f32.xlu0 %v299_v38 }
 0x222   :  { %v301_v40 = vpop.xlane.xlu0 %300 }
 0x223   :  { %v309_v41 = vadd.f32 %v358_v39, %v301_v40 }
 0x225   :  { %311 = vst.msk [vmem:[#allocation3] sm:$0xff] %vm310_vm4, %v309_v41 }
 0x22c   :  { %v330_v42 = vld [vmem:[#allocation3] sm:$0x3] }
 0x22d   :  { %331 = vst [vmem:[%s572_s9] sm:$0x3] %v330_v42 }

</bundles_post_ra>
